<compile_context>
chip_gen: v5e
topology: v5e:2x2
jax: 0.10.0
libtpu: 0.0.40
codegen_flags: <defaults>
</compile_context>

<pallas_src>
import functools
import numpy as np
import jax
import jax.numpy as jnp
from jax.experimental import pallas as pl
from jax.experimental.pallas import tpu as pltpu

DELTA = 1e-6          # torchkit utils.delta
LANES = 128           # TPU lane width


def _cdiv(a, b):
    return -(-a // b)


def _softplus(z):
    # numerically stable softplus (log1p form)
    return jnp.maximum(z, 0.0) + jnp.log1p(jnp.exp(-jnp.abs(z)))


def sigmoid_flow_kernel(x_ref, ld_ref, dsp_ref, xnew_ref, ld_out_ref, *, ndim):
    delta = DELTA
    # NOTE: mollify blend of the original forward is the default mollify=0.0
    # (identity), so it is omitted entirely.

    x = x_ref[...].astype(jnp.float32)        # (tr, 128)
    ld = ld_ref[...].astype(jnp.float32)      # (tr, 128)
    dsp = dsp_ref[...].astype(jnp.float32)    # (3*ndim, tr, 128)

    ap = dsp[0 * ndim:1 * ndim]               # static slices: free views
    bp = dsp[1 * ndim:2 * ndim]
    wp = dsp[2 * ndim:3 * ndim]

    # act_a = utils.softplus (= F.softplus + delta), act_b = identity
    a = _softplus(ap) + delta                 # (ndim, tr, 128)
    log_a = jnp.log(a)
    pre = a * x[None, :, :] + bp              # (ndim, tr, 128)

    # softmax / log_softmax over the small leading ndim axis (cheap VPU reduce)
    wmax = jnp.max(wp, axis=0, keepdims=True)
    wshift = wp - wmax
    wexp = jnp.exp(wshift)
    wsum = jnp.sum(wexp, axis=0, keepdims=True)
    inv_wsum = 1.0 / wsum                     # one reciprocal per (tr,128)
    w = wexp * inv_wsum
    log_w = wshift - jnp.log(wsum)

    # softplus/sigmoid identities: one softplus per element per ndim
    sp_neg = _softplus(-pre)                  # softplus(-pre)
    sigm = jnp.exp(-sp_neg)                   # sigmoid(pre) (exact identity)

    x_pre = jnp.sum(w * sigm, axis=0)         # (tr, 128)
    x_pre_clipped = x_pre * (1.0 - delta) + 0.5 * delta
    log_xpc = jnp.log(x_pre_clipped)          # hoisted, reused twice
    log_1m_xpc = jnp.log(1.0 - x_pre_clipped)
    xnew = log_xpc - log_1m_xpc

    # utils.logsigmoid(z) = -(softplus(-z) + delta);
    # softplus(pre) = pre + softplus(-pre) => second softplus is free.
    logsig_pos = -(sp_neg + delta)            # logsigmoid(pre)
    logsig_neg = logsig_pos - pre             # logsigmoid(-pre)
    logj = log_w + logsig_pos + logsig_neg + log_a   # (ndim, tr, 128)

    # log_sum_exp over the ndim axis
    m = jnp.max(logj, axis=0)
    lse = m + jnp.log(jnp.sum(jnp.exp(logj - m[None, :, :]), axis=0))

    logdet_ = lse + np.float32(np.log(1.0 - delta)) - log_xpc - log_1m_xpc

    xnew_ref[...] = xnew.astype(xnew_ref.dtype)
    ld_out_ref[...] = (logdet_ + ld).astype(ld_out_ref.dtype)


def sigmoid_flow(x, logdet, dsparams, num_ds_dim=4, tile_rows=256):
    """x, logdet: (n, p); dsparams: (n, p, 3*num_ds_dim). Returns (xnew, logdet_out)."""
    n, p = x.shape
    ndim = num_ds_dim
    assert dsparams.shape == (n, p, 3 * ndim)

    # keep the sublane tile a multiple of 8
    tile_rows = max(8, (tile_rows // 8) * 8)

    L = n * p
    R = _cdiv(L, LANES)
    if R <= tile_rows:
        tr = R                                 # single block: full-extent rows
        R_pad = R
    else:
        tr = tile_rows
        R_pad = _cdiv(R, tr) * tr
    L_pad = R_pad * LANES

    # ONE transpose of the parameter slab: (n, p, 3*ndim) -> (3*ndim, L)
    dsp = dsparams.reshape(L, 3 * ndim).T
    xf = x.reshape(L)
    ldf = logdet.reshape(L).astype(x.dtype)

    if L_pad != L:
        pad = L_pad - L
        xf = jnp.pad(xf, (0, pad))
        ldf = jnp.pad(ldf, (0, pad))
        dsp = jnp.pad(dsp, ((0, 0), (0, pad)))

    xr = xf.reshape(R_pad, LANES)
    ldr = ldf.reshape(R_pad, LANES)
    dspr = dsp.reshape(3 * ndim, R_pad, LANES)

    grid = (R_pad // tr,)
    spec2 = pl.BlockSpec((tr, LANES), lambda i: (i, 0))
    spec3 = pl.BlockSpec((3 * ndim, tr, LANES), lambda i: (0, i, 0))

    kernel = functools.partial(sigmoid_flow_kernel, ndim=ndim)
    xnew_r, ld_out_r = pl.pallas_call(
        kernel,
        out_shape=(jax.ShapeDtypeStruct((R_pad, LANES), x.dtype),
                   jax.ShapeDtypeStruct((R_pad, LANES), x.dtype)),
        grid=grid,
        in_specs=[spec2, spec2, spec3],
        out_specs=(spec2, spec2),
        input_output_aliases={1: 1},   # logdet_in buffer reused for logdet_out
        compiler_params=pltpu.CompilerParams(
            dimension_semantics=("parallel",)),
    )(xr, ldr, dspr)

    xnew = xnew_r.reshape(L_pad)[:L].reshape(n, p)
    ld_out = ld_out_r.reshape(L_pad)[:L].reshape(n, p)
    return xnew, ld_out


def sigmoid_flow_ref(x, logdet, dsparams, num_ds_dim=4):
    """Pure-JAX reference for correctness checking."""
    ndim = num_ds_dim
    delta = DELTA
    a = _softplus(dsparams[:, :, 0 * ndim:1 * ndim]) + delta
    b = dsparams[:, :, 1 * ndim:2 * ndim]
    wlog = jax.nn.log_softmax(dsparams[:, :, 2 * ndim:3 * ndim], axis=2)
    w = jnp.exp(wlog)
    pre = a * x[:, :, None] + b
    x_pre = jnp.sum(w * jax.nn.sigmoid(pre), axis=2)
    xpc = x_pre * (1 - delta) + delta * 0.5
    xnew = jnp.log(xpc) - jnp.log(1 - xpc)
    logj = wlog - (_softplus(-pre) + delta) - (_softplus(pre) + delta) + jnp.log(a)
    logj = jax.scipy.special.logsumexp(logj, axis=2)
    logdet_ = logj + np.log(1 - delta) - (jnp.log(xpc) + jnp.log(1 - xpc))
    return xnew, logdet_ + logdet


def _check(n, p, ndim, seed, **kw):
    key = jax.random.PRNGKey(seed)
    kx, kd, kl = jax.random.split(key, 3)
    x = jax.random.normal(kx, (n, p), dtype=jnp.float32)
    logdet = 0.1 * jax.random.normal(kl, (n, p), dtype=jnp.float32)
    dsparams = 0.5 * jax.random.normal(kd, (n, p, 3 * ndim), dtype=jnp.float32)

    xnew, logdet_out = sigmoid_flow(x, logdet, dsparams, num_ds_dim=ndim, **kw)
    jax.block_until_ready((xnew, logdet_out))

    xnew_r, logdet_r = sigmoid_flow_ref(x, logdet, dsparams, num_ds_dim=ndim)
    assert np.allclose(np.asarray(xnew), np.asarray(xnew_r), atol=1e-4, rtol=1e-4)
    assert np.allclose(np.asarray(logdet_out), np.asarray(logdet_r), atol=1e-4, rtol=1e-4)


if __name__ == "__main__":
    # small demo shape (single-block path)
    _check(n=8, p=16, ndim=4, seed=0)
    # shape that exercises padding + multi-block tiled/pipelined path
    _check(n=8, p=300, ndim=4, seed=1, tile_rows=8)
    print("KERNEL_OK")
</pallas_src>

<mosaic_0001>
module attributes {stable_mosaic.version = 11 : i64} {
  func.func @sigmoid_flow_kernel(%arg0: i32, %arg1: memref<1x128xf32, #tpu.memory_space<vmem>>, %arg2: memref<1x128xf32, #tpu.memory_space<vmem>>, %arg3: memref<12x1x128xf32, #tpu.memory_space<vmem>>, %arg4: memref<1x128xf32, #tpu.memory_space<vmem>>, %arg5: memref<1x128xf32, #tpu.memory_space<vmem>>) attributes {dimension_semantics = [#tpu.dimension_semantics<parallel>], iteration_bounds = array<i64: 1>, scalar_prefetch = 0 : i64, scratch_operands = 0 : i64, tpu.core_type = #tpu.core_type<tc>, window_params = [{transform_indices = @transform_0, window_bounds = array<i64: 1, 128>}, {transform_indices = @transform_1, window_bounds = array<i64: 1, 128>}, {transform_indices = @transform_2, window_bounds = array<i64: 12, 1, 128>}, {transform_indices = @transform_3, window_bounds = array<i64: 1, 128>}, {transform_indices = @transform_4, window_bounds = array<i64: 1, 128>}]} {
    %c0 = arith.constant 0 : index
    %c0_0 = arith.constant 0 : index
    %0 = vector.load %arg1[%c0, %c0_0] : memref<1x128xf32, #tpu.memory_space<vmem>>, vector<1x128xf32>
    %c0_1 = arith.constant 0 : index
    %c0_2 = arith.constant 0 : index
    %1 = vector.load %arg2[%c0_1, %c0_2] : memref<1x128xf32, #tpu.memory_space<vmem>>, vector<1x128xf32>
    %c0_3 = arith.constant 0 : index
    %c0_4 = arith.constant 0 : index
    %c0_5 = arith.constant 0 : index
    %2 = vector.load %arg3[%c0_3, %c0_4, %c0_5] : memref<12x1x128xf32, #tpu.memory_space<vmem>>, vector<12x1x128xf32>
    %3 = vector.extract_strided_slice %2 {offsets = [0, 0, 0], sizes = [4, 1, 128], strides = [1, 1, 1]} : vector<12x1x128xf32> to vector<4x1x128xf32>
    %4 = vector.extract_strided_slice %2 {offsets = [4, 0, 0], sizes = [4, 1, 128], strides = [1, 1, 1]} : vector<12x1x128xf32> to vector<4x1x128xf32>
    %5 = vector.extract_strided_slice %2 {offsets = [8, 0, 0], sizes = [4, 1, 128], strides = [1, 1, 1]} : vector<12x1x128xf32> to vector<4x1x128xf32>
    %cst = arith.constant 0.000000e+00 : f32
    %6 = vector.broadcast %cst : f32 to vector<4x1x128xf32>
    %7 = arith.maximumf %3, %6 : vector<4x1x128xf32>
    %8 = math.absf %3 : vector<4x1x128xf32>
    %cst_6 = arith.constant 0.000000e+00 : f32
    %9 = vector.broadcast %cst_6 : f32 to vector<4x1x128xf32>
    %10 = arith.subf %9, %8 : vector<4x1x128xf32>
    %11 = math.exp %10 : vector<4x1x128xf32>
    %12 = math.log1p %11 : vector<4x1x128xf32>
    %13 = arith.addf %7, %12 : vector<4x1x128xf32>
    %cst_7 = arith.constant 9.99999997E-7 : f32
    %14 = vector.broadcast %cst_7 : f32 to vector<4x1x128xf32>
    %15 = arith.addf %13, %14 : vector<4x1x128xf32>
    %16 = math.log %15 : vector<4x1x128xf32>
    %17 = vector.shape_cast %0 : vector<1x128xf32> to vector<1x1x128xf32>
    %18 = vector.broadcast %17 : vector<1x1x128xf32> to vector<4x1x128xf32>
    %19 = arith.mulf %15, %18 : vector<4x1x128xf32>
    %20 = arith.addf %19, %4 : vector<4x1x128xf32>
    %cst_8 = arith.constant dense<0xFF800000> : vector<1x128xf32>
    %21 = vector.multi_reduction <maximumf>, %5, %cst_8 [0] : vector<4x1x128xf32> to vector<1x128xf32>
    %22 = vector.shape_cast %21 : vector<1x128xf32> to vector<1x1x128xf32>
    %23 = vector.broadcast %22 : vector<1x1x128xf32> to vector<4x1x128xf32>
    %24 = arith.subf %5, %23 : vector<4x1x128xf32>
    %25 = math.exp %24 : vector<4x1x128xf32>
    %cst_9 = arith.constant dense<0.000000e+00> : vector<1x128xf32>
    %26 = vector.multi_reduction <add>, %25, %cst_9 [0] : vector<4x1x128xf32> to vector<1x128xf32>
    %27 = vector.shape_cast %26 : vector<1x128xf32> to vector<1x1x128xf32>
    %cst_10 = arith.constant 1.000000e+00 : f32
    %28 = vector.broadcast %cst_10 : f32 to vector<1x1x128xf32>
    %29 = arith.divf %28, %27 : vector<1x1x128xf32>
    %30 = vector.broadcast %29 : vector<1x1x128xf32> to vector<4x1x128xf32>
    %31 = arith.mulf %25, %30 : vector<4x1x128xf32>
    %32 = math.log %27 : vector<1x1x128xf32>
    %33 = vector.broadcast %32 : vector<1x1x128xf32> to vector<4x1x128xf32>
    %34 = arith.subf %24, %33 : vector<4x1x128xf32>
    %cst_11 = arith.constant 0.000000e+00 : f32
    %35 = vector.broadcast %cst_11 : f32 to vector<4x1x128xf32>
    %36 = arith.subf %35, %20 : vector<4x1x128xf32>
    %cst_12 = arith.constant 0.000000e+00 : f32
    %37 = vector.broadcast %cst_12 : f32 to vector<4x1x128xf32>
    %38 = arith.maximumf %36, %37 : vector<4x1x128xf32>
    %39 = math.absf %36 : vector<4x1x128xf32>
    %cst_13 = arith.constant 0.000000e+00 : f32
    %40 = vector.broadcast %cst_13 : f32 to vector<4x1x128xf32>
    %41 = arith.subf %40, %39 : vector<4x1x128xf32>
    %42 = math.exp %41 : vector<4x1x128xf32>
    %43 = math.log1p %42 : vector<4x1x128xf32>
    %44 = arith.addf %38, %43 : vector<4x1x128xf32>
    %cst_14 = arith.constant 0.000000e+00 : f32
    %45 = vector.broadcast %cst_14 : f32 to vector<4x1x128xf32>
    %46 = arith.subf %45, %44 : vector<4x1x128xf32>
    %47 = math.exp %46 : vector<4x1x128xf32>
    %48 = arith.mulf %31, %47 : vector<4x1x128xf32>
    %cst_15 = arith.constant dense<0.000000e+00> : vector<1x128xf32>
    %49 = vector.multi_reduction <add>, %48, %cst_15 [0] : vector<4x1x128xf32> to vector<1x128xf32>
    %cst_16 = arith.constant 0.999998986 : f32
    %50 = vector.broadcast %cst_16 : f32 to vector<1x128xf32>
    %51 = arith.mulf %49, %50 : vector<1x128xf32>
    %cst_17 = arith.constant 5.000000e-07 : f32
    %52 = vector.broadcast %cst_17 : f32 to vector<1x128xf32>
    %53 = arith.addf %51, %52 : vector<1x128xf32>
    %54 = math.log %53 : vector<1x128xf32>
    %cst_18 = arith.constant 1.000000e+00 : f32
    %55 = vector.broadcast %cst_18 : f32 to vector<1x128xf32>
    %56 = arith.subf %55, %53 : vector<1x128xf32>
    %57 = math.log %56 : vector<1x128xf32>
    %58 = arith.subf %54, %57 : vector<1x128xf32>
    %cst_19 = arith.constant 9.99999997E-7 : f32
    %59 = vector.broadcast %cst_19 : f32 to vector<4x1x128xf32>
    %60 = arith.addf %44, %59 : vector<4x1x128xf32>
    %cst_20 = arith.constant 0.000000e+00 : f32
    %61 = vector.broadcast %cst_20 : f32 to vector<4x1x128xf32>
    %62 = arith.subf %61, %60 : vector<4x1x128xf32>
    %63 = arith.subf %62, %20 : vector<4x1x128xf32>
    %64 = arith.addf %34, %62 : vector<4x1x128xf32>
    %65 = arith.addf %64, %63 : vector<4x1x128xf32>
    %66 = arith.addf %65, %16 : vector<4x1x128xf32>
    %cst_21 = arith.constant dense<0xFF800000> : vector<1x128xf32>
    %67 = vector.multi_reduction <maximumf>, %66, %cst_21 [0] : vector<4x1x128xf32> to vector<1x128xf32>
    %68 = vector.shape_cast %67 : vector<1x128xf32> to vector<1x1x128xf32>
    %69 = vector.broadcast %68 : vector<1x1x128xf32> to vector<4x1x128xf32>
    %70 = arith.subf %66, %69 : vector<4x1x128xf32>
    %71 = math.exp %70 : vector<4x1x128xf32>
    %cst_22 = arith.constant dense<0.000000e+00> : vector<1x128xf32>
    %72 = vector.multi_reduction <add>, %71, %cst_22 [0] : vector<4x1x128xf32> to vector<1x128xf32>
    %73 = math.log %72 : vector<1x128xf32>
    %74 = arith.addf %67, %73 : vector<1x128xf32>
    %cst_23 = arith.constant -1.00000045E-6 : f32
    %75 = vector.broadcast %cst_23 : f32 to vector<1x128xf32>
    %76 = arith.addf %74, %75 : vector<1x128xf32>
    %77 = arith.subf %76, %54 : vector<1x128xf32>
    %78 = arith.subf %77, %57 : vector<1x128xf32>
    %c0_24 = arith.constant 0 : index
    %c0_25 = arith.constant 0 : index
    %79 = vector.load %arg4[%c0_24, %c0_25] : memref<1x128xf32, #tpu.memory_space<vmem>>, vector<1x128xf32>
    tpu.vector_store %arg4[%c0_24, %c0_25], %58 {strides = array<i32>} : memref<1x128xf32, #tpu.memory_space<vmem>>, vector<1x128xf32>,
    %80 = arith.addf %78, %1 : vector<1x128xf32>
    %c0_26 = arith.constant 0 : index
    %c0_27 = arith.constant 0 : index
    %81 = vector.load %arg5[%c0_26, %c0_27] : memref<1x128xf32, #tpu.memory_space<vmem>>, vector<1x128xf32>
    tpu.vector_store %arg5[%c0_26, %c0_27], %80 {strides = array<i32>} : memref<1x128xf32, #tpu.memory_space<vmem>>, vector<1x128xf32>,
    return
  }
  func.func @transform_0(%arg0: i32) -> (i32, i32) {
    %c0_i32 = arith.constant 0 : i32
    %c0_i32_0 = arith.constant 0 : i32
    return %arg0, %c0_i32 : i32, i32
  }
  func.func @transform_1(%arg0: i32) -> (i32, i32) {
    %c0_i32 = arith.constant 0 : i32
    %c0_i32_0 = arith.constant 0 : i32
    return %arg0, %c0_i32 : i32, i32
  }
  func.func @transform_2(%arg0: i32) -> (i32, i32, i32) {
    %c0_i32 = arith.constant 0 : i32
    %c0_i32_0 = arith.constant 0 : i32
    %c0_i32_1 = arith.constant 0 : i32
    return %c0_i32, %arg0, %c0_i32_0 : i32, i32, i32
  }
  func.func @transform_3(%arg0: i32) -> (i32, i32) {
    %c0_i32 = arith.constant 0 : i32
    %c0_i32_0 = arith.constant 0 : i32
    return %arg0, %c0_i32 : i32, i32
  }
  func.func @transform_4(%arg0: i32) -> (i32, i32) {
    %c0_i32 = arith.constant 0 : i32
    %c0_i32_0 = arith.constant 0 : i32
    return %arg0, %c0_i32 : i32, i32
  }
}

</mosaic_0001>

<bundles_post_ra>
// kernel: tpu_custom_call.1
= control target key start
LH: loop header
LB: loop body
LE: loop exit
PB: predicated region body
PF: predicated region fallthrough
CT: control target
= control target key end

     0   :  { %10 = vsyncpa [#allocation3], 0  ;;  %s793_s0 = inlined_call_operand.vmem [shape: f32[1,128], index: 0, kind: input, shape index: {}]   ;;  %s794_s1 = inlined_call_operand.hbm [shape: f32[1,128], index: 1, kind: input, shape index: {}, may-alias: {1,4}]   ;;  %s795_s2 = inlined_call_operand.hbm [shape: f32[12,1,128], index: 2, kind: input, shape index: {}]   ;;  %s796_s3 = inlined_call_operand.hbm [shape: f32[1,128], index: 3, kind: output, shape index: {0}]   ;;  %s797_s4 = inlined_call_operand.hbm [shape: f32[1,128], index: 4, kind: output, shape index: {1}, may-alias: {1,4}]  }
   0x1   :  { %11 = vsyncpa [#allocation6], 0 }
   0x2   :  { %12 = vsyncpa [#allocation4], 0 }
   0x3   :  { %13 = vsyncpa [#allocation9], 0  ;;  %s21_s17 = sshll.u32 %s794_s1, 4  ;;  %s570_s18 = smov [#allocation2]   ;;  %s22_s17 = int_to_ptr.hbm [resolvable:$true] %s21_s17 }
   0x4   :  { %s23_s19 = sshll.u32 %s570_s18, 4  ;;  %s31_s22 = sshll.u32 %s795_s2, 4  ;;  %s24_s19 = int_to_ptr.vmem [resolvable:$true] %s23_s19  ;;  %s32_s22 = int_to_ptr.hbm [resolvable:$true] %s31_s22 }
   0x5   :  { %26 = dma.hbm_to_vmem [thread:$0]  %s22_s17, 16, %s24_s19, [#allocation3]  }
   0x6   :  { %s571_s23 = smov [#allocation5]   ;;  %s572_s25 = smov 16  }
   0x7   :  { %s33_s24 = sshll.u32 %s571_s23, 4  ;;  %s573_s26 = smov 1   ;;  %s34_s24 = int_to_ptr.vmem [resolvable:$true] %s33_s24 }
   0x8   :  { %39 = dma.hbm_to_vmem [thread:$0]  %s32_s22, 192, %s34_s24, [#allocation6], %s572_s25, %s572_s25, %s573_s26  }
   0x9   :  { %562 = dma.done.wait [#allocation3], 16  }
   0xa   :  { %563 = vsyncadd [#allocation3], 4294967280 }
   0xb   :  { %564 = dma.done.wait [#allocation6], 192  }
   0xc   :  { %565 = vsyncadd [#allocation6], 4294967104  ;;  %v607_v0 = vld [vmem:[#allocation5] sm:$0x1]  ;;  %v609_v1 = vld [vmem:[#allocation5 + $0x1] sm:$0x1]  ;;  %v142_v10 = vlaneseq }
   0xd   :  { %v611_v2 = vld [vmem:[#allocation5 + $0x2] sm:$0x1]  ;;  %v613_v3 = vld [vmem:[#allocation5 + $0x3] sm:$0x1]  ;;  %v66_v4 = vand.u32 2147483647, %v607_v0 }
   0xe   :  { %v67_v5 = vand.u32 2147483647, %v609_v1  ;;  %v68_v6 = vand.u32 2147483647, %v611_v2  ;;  %v58_v7 = vld [vmem:[#allocation5 + $0x8] sm:$0x1] }
   0xf   :  { %v59_v8 = vld [vmem:[#allocation5 + $0x9] sm:$0x1]  ;;  %v69_v9 = vand.u32 2147483647, %v613_v3  ;;  %v60_v11 = vld [vmem:[#allocation5 + $0xa] sm:$0x1] }
  0x10   :  { %v70_v12 = vsub.f32 0.0, %v66_v4  ;;  %v71_v13 = vsub.f32 0.0, %v67_v5  ;;  %v72_v14 = vsub.f32 0.0, %v68_v6  ;;  %v61_v15 = vld [vmem:[#allocation5 + $0xb] sm:$0x1]  ;;  %vm619_vm0 = vcmp.lt.s32.totalorder %v142_v10, 128 }
  0x11   :  { %v73_v16 = vsub.f32 0.0, %v69_v9  ;;  %v146_v22 = vsel %vm619_vm0, %v58_v7, -inf  ;;  %v147_v23 = vsel %vm619_vm0, %v59_v8, -inf  ;;  %v148_v24 = vsel %vm619_vm0, %v60_v11, -inf  ;;  %s359_s30 = sshll.u32 %s796_s3, 4  ;;  %s575_s3 = smov [#allocation8]   ;;  %s360_s30 = int_to_ptr.hbm [resolvable:$true] %s359_s30 }
  0x12   :  { %v74_v18 = vmul.f32 1.442695, %v70_v12  ;;  %v76_v19 = vmul.f32 1.442695, %v71_v13  ;;  %v78_v20 = vmul.f32 1.442695, %v72_v14  ;;  %v150_v26 = vmax.f32 %v146_v22, %v147_v23 }
  0x13   :  { %v80_v21 = vmul.f32 1.442695, %v73_v16  ;;  %v149_v25 = vsel %vm619_vm0, %v61_v15, -inf  ;;  %v62_v49 = vmax.f32 %v607_v0, 0.0  ;;  %v63_v56 = vmax.f32 %v609_v1, 0.0  ;;  %s368_s5 = sshll.u32 %s575_s3, 4  ;;  %s369_s5 = int_to_ptr.vmem [resolvable:$true] %s368_s5 }
  0x14   :  { %392 = vpow2.f32 %v74_v18  ;;  %v151_v27 = vmax.f32 %v148_v24, %v149_v25  ;;  %v64_v6 = vmax.f32 %v611_v2, 0.0  ;;  %vm165_vm4 = vcmask 1040384   ;;  %v48_v18 = vld [vmem:[%s793_s0] sm:$0x1]  ;;  %s574_s0 = smov [#allocation7]   ;;  %s370_s8 = sshll.u32 %s797_s4, 4  ;;  %s371_s8 = int_to_ptr.hbm [resolvable:$true] %s370_s8 }
  0x15   :  { %394 = vpow2.f32 %v76_v19  ;;  %v65_v13 = vmax.f32 %v613_v3, 0.0  ;;  %s357_s27 = sshll.u32 %s574_s0, 4  ;;  %s358_s27 = int_to_ptr.vmem [resolvable:$true] %s357_s27 }
  0x16   :  { %396 = vpow2.f32 %v78_v20  ;;  %v152_v28 = vmax.f32 %v150_v26, %v151_v27  ;;  %v54_v26 = vld [vmem:[#allocation5 + $0x4] sm:$0x1] }
  0x17   :  { %398 = vpow2.f32 %v80_v21 }
  0x18   :  { %v631_v30 = vsub.f32 %v58_v7, %v152_v28  ;;  %v633_v34 = vsub.f32 %v59_v8, %v152_v28  ;;  %v635_v38 = vsub.f32 %v60_v11, %v152_v28  ;;  %v637_v42 = vsub.f32 %v61_v15, %v152_v28 }
  0x1a   :  { %v393_v29 = vpop.eup %392  ;;  %v157_v45 = vmul.f32 1.442695, %v631_v30  ;;  %v159_v48 = vmul.f32 1.442695, %v633_v34  ;;  %v161_v54 = vmul.f32 1.442695, %v635_v38 }
  0x1b   :  { %v395_v31 = vpop.eup %394  ;;  %v82_v32 = vadd.f32 1.0, %v393_v29  ;;  %v85_v33 = vmul.f32 -0.5, %v393_v29  ;;  %v88_v40 = vand.u32 2147483647, %v393_v29  ;;  %v163_v55 = vmul.f32 1.442695, %v637_v42 }
  0x1c   :  { %v397_v35 = vpop.eup %396  ;;  %v91_v36 = vadd.f32 1.0, %v395_v31  ;;  %v94_v37 = vmul.f32 -0.5, %v395_v31  ;;  %v97_v50 = vand.u32 2147483647, %v395_v31 }
  0x1d   :  { %v399_v39 = vpop.eup %398  ;;  %400 = vlog2.f32 %v82_v32  ;;  %v100_v41 = vadd.f32 1.0, %v397_v35  ;;  %v86_v43 = vadd.f32 1.0, %v85_v33  ;;  %v103_v44 = vmul.f32 -0.5, %v397_v35  ;;  %v55_v32 = vld [vmem:[#allocation5 + $0x5] sm:$0x1] }
  0x1e   :  { %402 = vlog2.f32 %v91_v36  ;;  %v95_v46 = vadd.f32 1.0, %v94_v37  ;;  %v109_v47 = vadd.f32 1.0, %v399_v39  ;;  %v112_v52 = vmul.f32 -0.5, %v399_v39 }
  0x1f   :  { %404 = vlog2.f32 %v100_v41  ;;  %v104_v51 = vadd.f32 1.0, %v103_v44  ;;  %v106_v53 = vand.u32 2147483647, %v397_v35  ;;  %v87_v57 = vmul.f32 %v393_v29, %v86_v43 }
  0x20   :  { %406 = vlog2.f32 %v109_v47  ;;  %v113_v58 = vadd.f32 1.0, %v112_v52  ;;  %vm645_vm1 = vcmp.lt.f32.partialorder %v88_v40, 0.0004427343  ;;  %v96_v61 = vmul.f32 %v395_v31, %v95_v46 }
  0x21   :  { %408 = vpow2.f32 %v157_v45  ;;  %v115_v62 = vand.u32 2147483647, %v399_v39  ;;  %vm649_vm2 = vcmp.lt.f32.partialorder %v97_v50, 0.0004427343  ;;  %v105_v5 = vmul.f32 %v397_v35, %v104_v51 }
  0x22   :  { %410 = vpow2.f32 %v159_v48  ;;  %vm654_vm3 = vcmp.lt.f32.partialorder %v106_v53, 0.0004427343  ;;  %v114_v11 = vmul.f32 %v399_v39, %v113_v58  ;;  %v56_v39 = vld [vmem:[#allocation5 + $0x6] sm:$0x1]  ;;  %v57_v48 = vld [vmem:[#allocation5 + $0x7] sm:$0x1] }
  0x23   :  { %v401_v59 = vpop.eup %400  ;;  %412 = vpow2.f32 %v161_v54  ;;  %vm663_vm5 = vcmp.lt.f32.partialorder %v115_v62, 0.0004427343 }
  0x24   :  { %v403_v63 = vpop.eup %402  ;;  %v84_v0 = vmul.f32 0.6931472, %v401_v59  ;;  %414 = vpow2.f32 %v163_v55 }
  0x25   :  { %v405_v1 = vpop.eup %404  ;;  %v93_v7 = vmul.f32 0.6931472, %v403_v63 }
  0x26   :  { %v90_v9 = vsel %vm645_vm1, %v87_v57, %v84_v0  ;;  %v102_v10 = vmul.f32 0.6931472, %v405_v1  ;;  %v407_v12 = vpop.eup %406 }
  0x27   :  { %v99_v14 = vsel %vm649_vm2, %v96_v61, %v93_v7  ;;  %v118_v15 = vadd.f32 %v90_v9, %v62_v49  ;;  %v667_v16 = vpop.eup %408  ;;  %v111_v20 = vmul.f32 0.6931472, %v407_v12 }
  0x28   :  { %v108_v19 = vsel %vm654_vm3, %v105_v5, %v102_v10  ;;  %v119_v21 = vadd.f32 %v99_v14, %v63_v56  ;;  %v674_v3 = vpop.eup %410  ;;  %v166_v24 = vsel %vm165_vm4, %v667_v16, 0.0 }
  0x29   :  { %v120_v22 = vadd.f32 %v108_v19, %v64_v6  ;;  %v122_v23 = vadd.f32 1e-06, %v118_v15  ;;  %v678_v25 = vpop.eup %412  ;;  %v117_v27 = vsel %vm663_vm5, %v114_v11, %v111_v20  ;;  %v167_v29 = vsel %vm165_vm4, %v674_v3, 0.0 }
  0x2a   :  { %v123_v28 = vadd.f32 1e-06, %v119_v21  ;;  %v684_v31 = vpop.eup %414  ;;  %v121_v33 = vadd.f32 %v117_v27, %v65_v13  ;;  %v168_v37 = vadd.f32 %v167_v29, %v166_v24  ;;  %v169_v41 = vsel %vm165_vm4, %v678_v25, 0.0 }
  0x2b   :  { %v124_v35 = vadd.f32 1e-06, %v120_v22  ;;  %v134_v36 = vmul.f32 %v122_v23, %v48_v18  ;;  %v171_v43 = vsel %vm165_vm4, %v684_v31, 0.0 }
  0x2c   :  { %v135_v40 = vmul.f32 %v123_v28, %v48_v18  ;;  %v690_v44 = vadd.f32 1e-06, %v121_v33  ;;  %v170_v47 = vadd.f32 %v169_v41, %v168_v37 }
  0x2d   :  { %v136_v45 = vmul.f32 %v124_v35, %v48_v18  ;;  %v692_v46 = vadd.f32 %v134_v36, %v54_v26 }
  0x2e   :  { %v694_v49 = vadd.f32 %v135_v40, %v55_v32  ;;  %v137_v50 = vmul.f32 %v690_v44, %v48_v18  ;;  %v172_v52 = vadd.f32 %v171_v43, %v170_v47 }
  0x2f   :  { %v697_v51 = vadd.f32 %v136_v45, %v56_v39  ;;  %v198_v53 = vsub.f32 0.0, %v692_v46 }
  0x30   :  { %v199_v54 = vsub.f32 0.0, %v694_v49  ;;  %v701_v55 = vadd.f32 %v137_v50, %v57_v48  ;;  %416 = vrcp.f32 %v172_v52  ;;  %v182_v12 = vand.u32 2147483647, %v172_v52 }
  0x31   :  { %v200_v56 = vsub.f32 0.0, %v697_v51  ;;  %v206_v58 = vand.u32 2147483647, %v198_v53  ;;  %418 = vlog2.f32 %v172_v52  ;;  %v184_v14 = vand.u32 2147483648, %v172_v52 }
  0x32   :  { %v201_v57 = vsub.f32 0.0, %v701_v55  ;;  %v207_v59 = vand.u32 2147483647, %v199_v54  ;;  %vm178_vm6 = vweird.f32 %v172_v52  ;;  %vm709_vm7 = vcmp.eq.f32.partialorder %v182_v12, 8.507059e+37 }
  0x33   :  { %v208_v60 = vand.u32 2147483647, %v200_v56  ;;  %v210_v62 = vsub.f32 0.0, %v206_v58  ;;  %v202_v26 = vmax.f32 %v198_v53, 0.0  ;;  %v203_v27 = vmax.f32 %v199_v54, 0.0 }
  0x34   :  { %v209_v61 = vand.u32 2147483647, %v201_v57  ;;  %v211_v63 = vsub.f32 0.0, %v207_v59  ;;  %v185_v32 = vor.u32 1.1754944e-38, %v184_v14  ;;  %v204_v45 = vmax.f32 %v200_v56, 0.0 }
  0x35   :  { %v212_v0 = vsub.f32 0.0, %v208_v60  ;;  %v214_v1 = vmul.f32 1.442695, %v210_v62  ;;  %v205_v54 = vmax.f32 %v201_v57, 0.0 }
  0x36   :  { %v705_v4 = vpop.eup %416  ;;  %v213_v5 = vsub.f32 0.0, %v209_v61  ;;  %v216_v6 = vmul.f32 1.442695, %v211_v63 }
  0x37   :  { %v218_v7 = vmul.f32 1.442695, %v212_v0  ;;  %v174_v8 = vmul.f32 %v705_v4, %v172_v52  ;;  %420 = vpow2.f32 %v214_v1  ;;  %v419_v11 = vpop.eup %418  ;;  %vm179_vm8 = vweird.f32 %v705_v4 }
  0x38   :  { %v220_v9 = vmul.f32 1.442695, %v213_v5  ;;  %422 = vpow2.f32 %v216_v6  ;;  %v714_v33 = vmul.f32 0.6931472, %v419_v11  ;;  %vm718_vm9 = vmor %vm178_vm6, %vm179_vm8 }
  0x39   :  { %424 = vpow2.f32 %v218_v7  ;;  %v175_v10 = vsub.f32 1.0, %v174_v8 }
  0x3a   :  { %426 = vpow2.f32 %v220_v9  ;;  %v194_v53 = vsub.f32 %v631_v30, %v714_v33  ;;  %v195_v60 = vsub.f32 %v633_v34, %v714_v33  ;;  %v196_v6 = vsub.f32 %v635_v38, %v714_v33 }
  0x3b   :  { %428 = vlog2.f32 %v122_v23  ;;  %v176_v19 = vmul.f32 %v705_v4, %v175_v10  ;;  %v197_v34 = vsub.f32 %v637_v42, %v714_v33 }
  0x3c   :  { %430 = vlog2.f32 %v123_v28 }
  0x3d   :  { %v421_v13 = vpop.eup %420  ;;  %432 = vlog2.f32 %v124_v35  ;;  %v177_v28 = vadd.f32 %v705_v4, %v176_v19 }
  0x3e   :  { %v423_v2 = vpop.eup %422  ;;  %v222_v15 = vadd.f32 1.0, %v421_v13  ;;  %v225_v18 = vmul.f32 -0.5, %v421_v13  ;;  %v228_v39 = vand.u32 2147483647, %v421_v13 }
  0x3f   :  { %v231_v20 = vadd.f32 1.0, %v423_v2  ;;  %v234_v21 = vmul.f32 -0.5, %v423_v2  ;;  %v425_v22 = vpop.eup %424  ;;  %v237_v47 = vand.u32 2147483647, %v423_v2  ;;  %v181_v56 = vsel %vm718_vm9, %v705_v4, %v177_v28 }
  0x40   :  { %v427_v29 = vpop.eup %426  ;;  %434 = vlog2.f32 %v222_v15  ;;  %v226_v23 = vadd.f32 1.0, %v225_v18  ;;  %v240_v36 = vadd.f32 1.0, %v425_v22  ;;  %v243_v37 = vmul.f32 -0.5, %v425_v22 }
  0x41   :  { %436 = vlog2.f32 %v231_v20  ;;  %v235_v40 = vadd.f32 1.0, %v234_v21  ;;  %v249_v41 = vadd.f32 1.0, %v427_v29  ;;  %v429_v43 = vpop.eup %428  ;;  %v252_v48 = vmul.f32 -0.5, %v427_v29 }
  0x42   :  { %438 = vlog2.f32 %v240_v36  ;;  %v431_v50 = vpop.eup %430  ;;  %v244_v58 = vadd.f32 1.0, %v243_v37  ;;  %v227_v52 = vmul.f32 %v421_v13, %v226_v23  ;;  %v246_v61 = vand.u32 2147483647, %v425_v22 }
  0x43   :  { %440 = vlog2.f32 %v249_v41  ;;  %v433_v59 = vpop.eup %432  ;;  %v253_v62 = vadd.f32 1.0, %v252_v48  ;;  %vm729_vm10 = vcmp.lt.f32.partialorder %v228_v39, 0.0004427343  ;;  %v236_v5 = vmul.f32 %v423_v2, %v235_v40 }
  0x44   :  { %v255_v57 = vand.u32 2147483647, %v427_v29  ;;  %vm737_vm11 = vcmp.lt.f32.partialorder %v237_v47, 0.0004427343  ;;  %v245_v4 = vmul.f32 %v425_v22, %v244_v58  ;;  %v127_v10 = vmul.f32 0.6931472, %v429_v43 }
  0x45   :  { %442 = vlog2.f32 %v690_v44  ;;  %v186_v12 = vsel %vm709_vm7, %v185_v32, %v181_v56  ;;  %vm746_vm12 = vcmp.lt.f32.partialorder %v246_v61, 0.0004427343  ;;  %v254_v42 = vmul.f32 %v427_v29, %v253_v62 }
  0x46   :  { %v435_v63 = vpop.eup %434  ;;  %vm752_vm13 = vcmp.lt.f32.partialorder %v255_v57, 0.0004427343  ;;  %v129_v21 = vmul.f32 0.6931472, %v431_v50  ;;  %v131_v22 = vmul.f32 0.6931472, %v433_v59  ;;  %v188_v24 = vmul.f32 %v667_v16, %v186_v12 }
  0x47   :  { %v437_v1 = vpop.eup %436  ;;  %v224_v7 = vmul.f32 0.6931472, %v435_v63  ;;  %v191_v33 = vmul.f32 %v684_v31, %v186_v12 }
  0x48   :  { %v233_v9 = vmul.f32 0.6931472, %v437_v1  ;;  %v439_v11 = vpop.eup %438 }
  0x49   :  { %v230_v38 = vsel %vm729_vm10, %v227_v52, %v224_v7  ;;  %v441_v14 = vpop.eup %440  ;;  %v242_v15 = vmul.f32 0.6931472, %v439_v11 }
  0x4a   :  { %v239_v2 = vsel %vm737_vm11, %v236_v5, %v233_v9  ;;  %v258_v44 = vadd.f32 %v230_v38, %v202_v26  ;;  %v251_v19 = vmul.f32 0.6931472, %v441_v14  ;;  %v189_v26 = vmul.f32 %v674_v3, %v186_v12 }
  0x4b   :  { %v259_v20 = vadd.f32 %v239_v2, %v203_v27  ;;  %v248_v32 = vsel %vm746_vm12, %v245_v4, %v242_v15  ;;  %v443_v40 = vpop.eup %442  ;;  %v190_v9 = vmul.f32 %v678_v25, %v186_v12 }
  0x4c   :  { %v262_v29 = vsub.f32 0.0, %v258_v44  ;;  %v293_v23 = vadd.f32 1e-06, %v258_v44  ;;  %v257_v36 = vsel %vm752_vm13, %v254_v42, %v251_v19  ;;  %v260_v37 = vadd.f32 %v248_v32, %v204_v45 }
  0x4d   :  { %v263_v28 = vsub.f32 0.0, %v259_v20  ;;  %v294_v39 = vadd.f32 1e-06, %v259_v20  ;;  %v261_v41 = vadd.f32 %v257_v36, %v205_v54  ;;  %v133_v5 = vmul.f32 0.6931472, %v443_v40 }
  0x4e   :  { %v266_v27 = vmul.f32 1.442695, %v262_v29  ;;  %v297_v43 = vsub.f32 0.0, %v293_v23  ;;  %v264_v35 = vsub.f32 0.0, %v260_v37  ;;  %v295_v16 = vadd.f32 1e-06, %v260_v37 }
  0x4f   :  { %v268_v47 = vmul.f32 1.442695, %v263_v28  ;;  %v298_v48 = vsub.f32 0.0, %v294_v39  ;;  %v265_v50 = vsub.f32 0.0, %v261_v41  ;;  %v296_v58 = vadd.f32 1e-06, %v261_v41 }
  0x50   :  { %444 = vpow2.f32 %v266_v27  ;;  %v301_v59 = vsub.f32 %v297_v43, %v692_v46  ;;  %v270_v52 = vmul.f32 1.442695, %v264_v35  ;;  %v299_v45 = vsub.f32 0.0, %v295_v16 }
  0x51   :  { %446 = vpow2.f32 %v268_v47  ;;  %v302_v61 = vsub.f32 %v298_v48, %v694_v49  ;;  %v272_v62 = vmul.f32 1.442695, %v265_v50  ;;  %v300_v63 = vsub.f32 0.0, %v296_v58 }
  0x52   :  { %v305_v3 = vadd.f32 %v297_v43, %v194_v53  ;;  %v306_v54 = vadd.f32 %v298_v48, %v195_v60  ;;  %448 = vpow2.f32 %v270_v52  ;;  %v303_v56 = vsub.f32 %v299_v45, %v697_v51 }
  0x53   :  { %v307_v0 = vadd.f32 %v299_v45, %v196_v6  ;;  %450 = vpow2.f32 %v272_v62  ;;  %v304_v46 = vsub.f32 %v300_v63, %v701_v55  ;;  %v308_v57 = vadd.f32 %v300_v63, %v197_v34 }
  0x54   :  { %v309_v1 = vadd.f32 %v305_v3, %v301_v59  ;;  %v310_v7 = vadd.f32 %v306_v54, %v302_v61 }
  0x55   :  { %v311_v8 = vadd.f32 %v307_v0, %v303_v56  ;;  %v312_v4 = vadd.f32 %v308_v57, %v304_v46 }
  0x56   :  { %v445_v49 = vpop.eup %444  ;;  %v313_v11 = vadd.f32 %v309_v1, %v127_v10  ;;  %v314_v60 = vadd.f32 %v310_v7, %v129_v21  ;;  %v49_v1 = vld [vmem:[#allocation2] sm:$0x1] }
  0x57   :  { %v447_v30 = vpop.eup %446  ;;  %v274_v53 = vmul.f32 %v445_v49, %v188_v24  ;;  %v315_v51 = vadd.f32 %v311_v8, %v131_v22  ;;  %v316_v38 = vadd.f32 %v312_v4, %v133_v5 }
  0x58   :  { %v275_v6 = vmul.f32 %v447_v30, %v189_v26  ;;  %v317_v55 = vsel %vm619_vm0, %v313_v11, -inf  ;;  %v449_v34 = vpop.eup %448  ;;  %v318_v42 = vsel %vm619_vm0, %v314_v60, -inf }
  0x59   :  { %v278_v13 = vsel %vm165_vm4, %v274_v53, 0.0  ;;  %v319_v25 = vsel %vm619_vm0, %v315_v51, -inf  ;;  %v451_v10 = vpop.eup %450  ;;  %v276_v14 = vmul.f32 %v449_v34, %v190_v9  ;;  %v320_v12 = vsel %vm619_vm0, %v316_v38, -inf }
  0x5a   :  { %v279_v31 = vsel %vm165_vm4, %v275_v6, 0.0  ;;  %v321_v2 = vmax.f32 %v317_v55, %v318_v42  ;;  %v277_v15 = vmul.f32 %v451_v10, %v191_v33  ;;  %v322_v44 = vmax.f32 %v319_v25, %v320_v12 }
  0x5b   :  { %v280_v18 = vadd.f32 %v279_v31, %v278_v13  ;;  %v281_v19 = vsel %vm165_vm4, %v276_v14, 0.0 }
  0x5c   :  { %v283_v21 = vsel %vm165_vm4, %v277_v15, 0.0  ;;  %v323_v22 = vmax.f32 %v321_v2, %v322_v44 }
  0x5d   :  { %v282_v20 = vadd.f32 %v281_v19, %v280_v18 }
  0x5e   :  { %v324_v32 = vsub.f32 %v313_v11, %v323_v22  ;;  %v325_v29 = vsub.f32 %v314_v60, %v323_v22  ;;  %v326_v23 = vsub.f32 %v315_v51, %v323_v22  ;;  %v327_v36 = vsub.f32 %v316_v38, %v323_v22 }
  0x5f   :  { %v284_v24 = vadd.f32 %v283_v21, %v282_v20 }
  0x60   :  { %v328_v28 = vmul.f32 1.442695, %v324_v32  ;;  %v330_v39 = vmul.f32 1.442695, %v325_v29  ;;  %v332_v17 = vmul.f32 1.442695, %v326_v23 }
  0x61   :  { %v285_v37 = vmul.f32 0.999999, %v284_v24  ;;  %v334_v26 = vmul.f32 1.442695, %v327_v36 }
  0x62   :  { %452 = vpow2.f32 %v328_v28 }
  0x63   :  { %v286_v40 = vadd.f32 5e-07, %v285_v37  ;;  %454 = vpow2.f32 %v330_v39 }
  0x65   :  { %456 = vlog2.f32 %v286_v40  ;;  %v289_v41 = vsub.f32 1.0, %v286_v40 }
  0x66   :  { %458 = vpow2.f32 %v332_v17 }
  0x67   :  { %460 = vlog2.f32 %v289_v41 }
  0x68   :  { %462 = vpow2.f32 %v334_v26  ;;  %v453_v27 = vpop.eup %452 }
  0x69   :  { %v455_v43 = vpop.eup %454  ;;  %v336_v35 = vsel %vm165_vm4, %v453_v27, 0.0 }
  0x6a   :  { %v337_v16 = vsel %vm165_vm4, %v455_v43, 0.0 }
  0x6b   :  { %v457_v47 = vpop.eup %456  ;;  %v338_v50 = vadd.f32 %v337_v16, %v336_v35 }
  0x6c   :  { %v459_v48 = vpop.eup %458  ;;  %v288_v45 = vmul.f32 0.6931472, %v457_v47 }
  0x6d   :  { %v461_v58 = vpop.eup %460  ;;  %v339_v59 = vsel %vm165_vm4, %v459_v48, 0.0 }
  0x6e   :  { %v463_v52 = vpop.eup %462  ;;  %v291_v61 = vmul.f32 0.6931472, %v461_v58  ;;  %v340_v62 = vadd.f32 %v339_v59, %v338_v50 }
  0x6f   :  { %v341_v63 = vsel %vm165_vm4, %v463_v52, 0.0 }
  0x70   :  { %v292_v3 = vsub.f32 %v288_v45, %v291_v61  ;;  %v342_v54 = vadd.f32 %v341_v63, %v340_v62 }
  0x72   :  { %349 = vst [vmem:[#allocation7] sm:$0x1] %v292_v3  ;;  %464 = vlog2.f32 %v342_v54 }
  0x73   :  { %362 = dma.vmem_to_hbm [thread:$0]  %s358_s27, 16, %s360_s30, [#allocation4]  }
  0x78   :  { %v465_v56 = vpop.eup %464 }
  0x79   :  { %v344_v0 = vmul.f32 0.6931472, %v465_v56 }
  0x7b   :  { %v345_v5 = vadd.f32 %v344_v0, %v323_v22 }
  0x7d   :  { %v346_v46 = vadd.f32 -1.0000005e-06, %v345_v5 }
  0x7f   :  { %v347_v57 = vsub.f32 %v346_v46, %v288_v45 }
  0x81   :  { %v348_v7 = vsub.f32 %v347_v57, %v291_v61 }
  0x83   :  { %v350_v8 = vadd.f32 %v348_v7, %v49_v1 }
  0x85   :  { %351 = vst [vmem:[#allocation8] sm:$0x1] %v350_v8 }
  0x86   :  { %373 = dma.vmem_to_hbm [thread:$0]  %s369_s5, 16, %s371_s8, [#allocation9]  }
  0x87   :  { %566 = dma.done.wait [#allocation4], 16  }
  0x88   :  { %567 = vsyncadd [#allocation4], 4294967280 }
  0x89   :  { %568 = dma.done.wait [#allocation9], 16  }
  0x8a   :  { %569 = vsyncadd [#allocation9], 4294967280 }
  0x8b   :  { %382 = vsyncpa [#allocation3], 1 }
  0x8c   :  { %383 = vsyncpa [#allocation6], 1 }
  0x8d   :  { %384 = vsyncpa [#allocation4], 1 }
  0x8e   :  { %385 = vsyncpa [#allocation9], 1 }

</bundles_post_ra>
